<compile_context>
chip_gen: v5e
topology: v5e:2x2
jax: 0.10.0
libtpu: 0.0.40
codegen_flags: <defaults>
</compile_context>

<pallas_src>
import jax
import jax.numpy as jnp
from jax.experimental import pallas as pl
from jax.experimental.pallas import tpu as pltpu

INPUT_SIZE = 28 * 28        # 784
HIDDEN_1 = 300
NUM_CLASSES = 10

# 128-aligned (lane-dense) padded dims.
IN_PAD = 896                # 7 * 128
HID_PAD = 384               # 3 * 128
OUT_PAD = 128               # 1 * 128


def _round_up(n, m):
    return (n + m - 1) // m * m


def mlp_kernel(x_ref, w1_ref, b1_ref, w2_ref, b2_ref, o_ref):
    # x / weights are bf16 (half the HBM bytes, 2x MXU rate); accumulation,
    # bias-add and ReLU stay in f32 on the VPU.
    h = jnp.dot(x_ref[...], w1_ref[...], preferred_element_type=jnp.float32)
    h = jnp.maximum(h + b1_ref[...], 0.0)                      # ReLU (f32)
    y = jnp.dot(h.astype(jnp.bfloat16), w2_ref[...],
                preferred_element_type=jnp.float32)
    o_ref[...] = (y + b2_ref[...]).astype(o_ref.dtype)


def prepare_params(w1, b1, w2, b2):
    """One-time: zero-pad params to 128-aligned shapes, cast weights to bf16."""
    w1p = jnp.zeros((IN_PAD, HID_PAD), jnp.float32).at[:INPUT_SIZE, :HIDDEN_1].set(w1)
    b1p = jnp.zeros((1, HID_PAD), jnp.float32).at[:, :HIDDEN_1].set(b1.reshape(1, -1))
    w2p = jnp.zeros((HID_PAD, OUT_PAD), jnp.float32).at[:HIDDEN_1, :NUM_CLASSES].set(w2)
    b2p = jnp.zeros((1, OUT_PAD), jnp.float32).at[:, :NUM_CLASSES].set(b2.reshape(1, -1))
    return w1p.astype(jnp.bfloat16), b1p, w2p.astype(jnp.bfloat16), b2p


def neural_net_forward(x, w1p, b1p, w2p, b2p):
    B = x.shape[0]
    # Single grid step for small batches (grid overhead would not amortize the
    # resident-weight DMA); 256-row tiles otherwise so the MXU is filled and
    # the x DMA is pipelined. A (256, 896) bf16 x tile is ~0.45 MB -> fits
    # comfortably everywhere, including v7x's 64 MiB VMEM.
    TB = _round_up(B, 8) if B <= 256 else 256
    B_pad = _round_up(B, TB)

    # Pad x to [B_pad, IN_PAD] and store it bf16 (halves x HBM traffic too).
    xp = jnp.zeros((B_pad, IN_PAD), jnp.bfloat16)
    xp = xp.at[:B, :INPUT_SIZE].set(x.astype(jnp.bfloat16))

    flops = 2 * B_pad * (IN_PAD * HID_PAD + HID_PAD * OUT_PAD)
    bytes_accessed = (xp.size * 2 + w1p.size * 2 + w2p.size * 2
                      + b1p.size * 4 + b2p.size * 4 + B_pad * OUT_PAD * 4)

    out_pad = pl.pallas_call(
        mlp_kernel,
        out_shape=jax.ShapeDtypeStruct((B_pad, OUT_PAD), jnp.float32),
        grid=(B_pad // TB,),
        in_specs=[
            pl.BlockSpec((TB, IN_PAD), lambda i: (i, 0)),        # x: tiled over batch
            pl.BlockSpec((IN_PAD, HID_PAD), lambda i: (0, 0)),   # weights stay resident
            pl.BlockSpec((1, HID_PAD), lambda i: (0, 0)),
            pl.BlockSpec((HID_PAD, OUT_PAD), lambda i: (0, 0)),
            pl.BlockSpec((1, OUT_PAD), lambda i: (0, 0)),
        ],
        out_specs=pl.BlockSpec((TB, OUT_PAD), lambda i: (i, 0)),
        compiler_params=pltpu.CompilerParams(
            dimension_semantics=("parallel",),   # v7x: shard batch over both TCs
        ),
        cost_estimate=pl.CostEstimate(flops=flops, transcendentals=0,
                                      bytes_accessed=bytes_accessed),
    )(xp, w1p, b1p, w2p, b2p)

    # Slice off batch padding + lane padding (kernel stores a lane-dense slab).
    return out_pad[:B, :NUM_CLASSES]


def init_params(key):
    # Deterministic init mimicking PyTorch nn.Linear default:
    # U(-1/sqrt(fan_in), 1/sqrt(fan_in)) for both weight and bias.
    k1, k2, k3, k4 = jax.random.split(key, 4)
    bound1 = 1.0 / jnp.sqrt(INPUT_SIZE)
    bound2 = 1.0 / jnp.sqrt(HIDDEN_1)
    # Weights stored as [in, out] (transpose of PyTorch's [out, in]).
    w1 = jax.random.uniform(k1, (INPUT_SIZE, HIDDEN_1), jnp.float32, -bound1, bound1)
    b1 = jax.random.uniform(k2, (HIDDEN_1,), jnp.float32, -bound1, bound1)
    w2 = jax.random.uniform(k3, (HIDDEN_1, NUM_CLASSES), jnp.float32, -bound2, bound2)
    b2 = jax.random.uniform(k4, (NUM_CLASSES,), jnp.float32, -bound2, bound2)
    return w1, b1, w2, b2


if __name__ == "__main__":
    key = jax.random.PRNGKey(0)
    kx, kp = jax.random.split(key)

    batch = 8
    x = jax.random.normal(kx, (batch, INPUT_SIZE), jnp.float32)
    w1, b1, w2, b2 = init_params(kp)
    w1p, b1p, w2p, b2p = prepare_params(w1, b1, w2, b2)

    out = neural_net_forward(x, w1p, b1p, w2p, b2p)
    out = jax.block_until_ready(out)

    # Pure-JAX f32 reference (unpadded weights); tolerance accounts for bf16
    # weight/activation storage inside the kernel.
    ref = jnp.maximum(x @ w1 + b1, 0.0) @ w2 + b2
    assert out.shape == (batch, NUM_CLASSES)
    assert jnp.allclose(out, ref, atol=5e-2, rtol=5e-2)

    print("KERNEL_OK")
</pallas_src>

<mosaic_0001>
module attributes {stable_mosaic.version = 11 : i64} {
  func.func @mlp_kernel(%arg0: i32, %arg1: memref<8x896xbf16, #tpu.memory_space<vmem>>, %arg2: memref<896x384xbf16, #tpu.memory_space<vmem>>, %arg3: memref<1x384xf32, #tpu.memory_space<vmem>>, %arg4: memref<384x128xbf16, #tpu.memory_space<vmem>>, %arg5: memref<1x128xf32, #tpu.memory_space<vmem>>, %arg6: memref<8x128xf32, #tpu.memory_space<vmem>>) attributes {dimension_semantics = [#tpu.dimension_semantics<parallel>], iteration_bounds = array<i64: 1>, scalar_prefetch = 0 : i64, scratch_operands = 0 : i64, tpu.core_type = #tpu.core_type<tc>, window_params = [{transform_indices = @transform_0, window_bounds = array<i64: 8, 896>}, {pipeline_mode = #tpu.pipeline_mode<synchronous>, transform_indices = @transform_1, window_bounds = array<i64: 896, 384>}, {pipeline_mode = #tpu.pipeline_mode<synchronous>, transform_indices = @transform_2, window_bounds = array<i64: 1, 384>}, {pipeline_mode = #tpu.pipeline_mode<synchronous>, transform_indices = @transform_3, window_bounds = array<i64: 384, 128>}, {pipeline_mode = #tpu.pipeline_mode<synchronous>, transform_indices = @transform_4, window_bounds = array<i64: 1, 128>}, {transform_indices = @transform_5, window_bounds = array<i64: 8, 128>}]} {
    %c0 = arith.constant 0 : index
    %c0_0 = arith.constant 0 : index
    %0 = vector.load %arg1[%c0, %c0_0] : memref<8x896xbf16, #tpu.memory_space<vmem>>, vector<8x896xbf16>
    %c0_1 = arith.constant 0 : index
    %c0_2 = arith.constant 0 : index
    %1 = vector.load %arg2[%c0_1, %c0_2] : memref<896x384xbf16, #tpu.memory_space<vmem>>, vector<896x384xbf16>
    %cst = arith.constant dense<0.000000e+00> : vector<8x384xf32>
    %2 = tpu.matmul %0, %1, %cst {dimension_numbers = #tpu.dot_dimension_numbers<[1], [0], [0], [1], [0, 0, 1, 1], [], []>} : vector<8x896xbf16>, vector<896x384xbf16>, vector<8x384xf32> -> vector<8x384xf32>
    %c0_3 = arith.constant 0 : index
    %c0_4 = arith.constant 0 : index
    %3 = vector.load %arg3[%c0_3, %c0_4] : memref<1x384xf32, #tpu.memory_space<vmem>>, vector<1x384xf32>
    %4 = vector.broadcast %3 : vector<1x384xf32> to vector<8x384xf32>
    %5 = arith.addf %2, %4 : vector<8x384xf32>
    %cst_5 = arith.constant 0.000000e+00 : f32
    %6 = vector.broadcast %cst_5 : f32 to vector<8x384xf32>
    %7 = arith.maximumf %5, %6 : vector<8x384xf32>
    %8 = arith.truncf %7 : vector<8x384xf32> to vector<8x384xbf16>
    %c0_6 = arith.constant 0 : index
    %c0_7 = arith.constant 0 : index
    %9 = vector.load %arg4[%c0_6, %c0_7] : memref<384x128xbf16, #tpu.memory_space<vmem>>, vector<384x128xbf16>
    %cst_8 = arith.constant dense<0.000000e+00> : vector<8x128xf32>
    %10 = tpu.matmul %8, %9, %cst_8 {dimension_numbers = #tpu.dot_dimension_numbers<[1], [0], [0], [1], [0, 0, 1, 1], [], []>} : vector<8x384xbf16>, vector<384x128xbf16>, vector<8x128xf32> -> vector<8x128xf32>
    %c0_9 = arith.constant 0 : index
    %c0_10 = arith.constant 0 : index
    %11 = vector.load %arg5[%c0_9, %c0_10] : memref<1x128xf32, #tpu.memory_space<vmem>>, vector<1x128xf32>
    %12 = vector.broadcast %11 : vector<1x128xf32> to vector<8x128xf32>
    %13 = arith.addf %10, %12 : vector<8x128xf32>
    %c0_11 = arith.constant 0 : index
    %c0_12 = arith.constant 0 : index
    %14 = vector.load %arg6[%c0_11, %c0_12] : memref<8x128xf32, #tpu.memory_space<vmem>>, vector<8x128xf32>
    tpu.vector_store %arg6[%c0_11, %c0_12], %13 {strides = array<i32>} : memref<8x128xf32, #tpu.memory_space<vmem>>, vector<8x128xf32>,
    return
  }
  func.func @transform_0(%arg0: i32) -> (i32, i32) {
    %c0_i32 = arith.constant 0 : i32
    %c0_i32_0 = arith.constant 0 : i32
    return %arg0, %c0_i32 : i32, i32
  }
  func.func @transform_1(%arg0: i32) -> (i32, i32) {
    %c0_i32 = arith.constant 0 : i32
    %c0_i32_0 = arith.constant 0 : i32
    %c0_i32_1 = arith.constant 0 : i32
    return %c0_i32, %c0_i32_0 : i32, i32
  }
  func.func @transform_2(%arg0: i32) -> (i32, i32) {
    %c0_i32 = arith.constant 0 : i32
    %c0_i32_0 = arith.constant 0 : i32
    %c0_i32_1 = arith.constant 0 : i32
    return %c0_i32, %c0_i32_0 : i32, i32
  }
  func.func @transform_3(%arg0: i32) -> (i32, i32) {
    %c0_i32 = arith.constant 0 : i32
    %c0_i32_0 = arith.constant 0 : i32
    %c0_i32_1 = arith.constant 0 : i32
    return %c0_i32, %c0_i32_0 : i32, i32
  }
  func.func @transform_4(%arg0: i32) -> (i32, i32) {
    %c0_i32 = arith.constant 0 : i32
    %c0_i32_0 = arith.constant 0 : i32
    %c0_i32_1 = arith.constant 0 : i32
    return %c0_i32, %c0_i32_0 : i32, i32
  }
  func.func @transform_5(%arg0: i32) -> (i32, i32) {
    %c0_i32 = arith.constant 0 : i32
    %c0_i32_0 = arith.constant 0 : i32
    return %arg0, %c0_i32 : i32, i32
  }
}

</mosaic_0001>

<bundles_post_ra>
// kernel: tpu_custom_call.1
= control target key start
LH: loop header
LB: loop body
LE: loop exit
PB: predicated region body
PF: predicated region fallthrough
CT: control target
= control target key end

     0   :  { %10 = vsyncpa [#allocation3], 0  ;;  %s2966_s0 = inlined_call_operand.hbm [shape: bf16[8,896], index: 0, kind: input, shape index: {}]   ;;  %s2967_s1 = inlined_call_operand.hbm [shape: bf16[896,384], index: 1, kind: input, shape index: {}]   ;;  %s2968_s2 = inlined_call_operand.hbm [shape: f32[1,384], index: 2, kind: input, shape index: {}]   ;;  %s2969_s3 = inlined_call_operand.hbm [shape: bf16[384,128], index: 3, kind: input, shape index: {}]   ;;  %s2970_s4 = inlined_call_operand.vmem [shape: f32[1,128], index: 4, kind: input, shape index: {}]   ;;  %s2971_s5 = inlined_call_operand.hbm [shape: f32[8,128], index: 5, kind: output, shape index: {}]  }
   0x1   :  { %11 = vsyncpa [#allocation6], 0 }
   0x2   :  { %12 = vsyncpa [#allocation9], 0  ;;  %s29_s20 = sshll.u32 %s2967_s1, 4  ;;  %s30_s20 = int_to_ptr.hbm [resolvable:$true] %s29_s20 }
   0x3   :  { %13 = vsyncpa [#allocation4], 0  ;;  %s2869_s21 = smov [#allocation5]   ;;  %s19_s25 = sshll.u32 %s2966_s0, 4  ;;  %s20_s25 = int_to_ptr.hbm [resolvable:$true] %s19_s25 }
   0x4   :  { %s31_s22 = sshll.u32 %s2869_s21, 4  ;;  %s2870_s26 = smov 192   ;;  %s32_s22 = int_to_ptr.vmem [resolvable:$true] %s31_s22 }
   0x5   :  { %s2871_s27 = smov 12   ;;  %s2872_s28 = smov [#allocation2]  }
   0x6   :  { %37 = dma.hbm_to_vmem [thread:$0]  %s30_s20, 21504, %s32_s22, [#allocation6], %s2870_s26, %s2870_s26, %s2871_s27  }
   0x7   :  { %s21_s29 = sshll.u32 %s2872_s28, 4  ;;  %s43_s7 = sshll.u32 %s2968_s2, 4  ;;  %s22_s29 = int_to_ptr.vmem [resolvable:$true] %s21_s29  ;;  %s44_s7 = int_to_ptr.hbm [resolvable:$true] %s43_s7 }
   0x8   :  { %24 = dma.hbm_to_vmem [thread:$0]  %s20_s25, 448, %s22_s29, [#allocation3]  }
   0x9   :  { %s53_s9 = sshll.u32 %s2969_s3, 4  ;;  %s2873_s10 = smov [#allocation7]   ;;  %s54_s9 = int_to_ptr.hbm [resolvable:$true] %s53_s9 }
   0xa   :  { %s45_s11 = sshll.u32 %s2873_s10, 4  ;;  %s2874_s0 = smov [#allocation8]   ;;  %s46_s11 = int_to_ptr.vmem [resolvable:$true] %s45_s11 }
   0xb   :  { %48 = dma.hbm_to_vmem [thread:$0]  %s44_s7, 48, %s46_s11, [#allocation6]  }
   0xc   :  { %s55_s12 = sshll.u32 %s2874_s0, 4  ;;  %s2875_s13 = smov 64   ;;  %s56_s12 = int_to_ptr.vmem [resolvable:$true] %s55_s12 }
   0xd   :  { %s2876_s14 = smov 4  }
   0xe   :  { %61 = dma.hbm_to_vmem [thread:$0]  %s54_s9, 3072, %s56_s12, [#allocation9], %s2875_s13, %s2875_s13, %s2876_s14  }
   0xf   :  { %2861 = dma.done.wait [#allocation3], 448  }
  0x10   :  { %2862 = vsyncadd [#allocation3], 4294966848 }
  0x11   :  { %2863 = dma.done.wait [#allocation6], 21552  }
  0x12   :  { %2864 = vsyncadd [#allocation6], 4294945744 }
  0x13   :  { %2865 = dma.done.wait [#allocation9], 3072  }
  0x14   :  { %2866 = vsyncadd [#allocation9], 4294964224  ;;  %v1857_v0 = vld [vmem:[#allocation5 + $0xa8] sm:$0xf]  ;;  %v2561_v1 = vld [vmem:[#allocation5 + $0xb0] sm:$0xf0] }
  0x15   :  { %v2049_v2 = vld [vmem:[#allocation5 + $0x228] sm:$0xf]  ;;  %v1858_v3 = vor.u32 %v2561_v1, %v1857_v0  ;;  %v2609_v4 = vld [vmem:[#allocation5 + $0x230] sm:$0xf0]  ;;  %v1845_v9 = vld [vmem:[#allocation5 + $0x90] sm:$0xf] }
  0x16   :  { %v1953_v5 = vld [vmem:[#allocation5 + $0x168] sm:$0xf]  ;;  %v2585_v6 = vld [vmem:[#allocation5 + $0x170] sm:$0xf0]  ;;  %v2050_v7 = vor.u32 %v2609_v4, %v2049_v2  ;;  %v2558_v10 = vld [vmem:[#allocation5 + $0x98] sm:$0xf0] }
  0x17   :  { %v1954_v8 = vor.u32 %v2585_v6, %v1953_v5  ;;  %v2037_v11 = vld [vmem:[#allocation5 + $0x210] sm:$0xf]  ;;  %1237 = vmatpush.bf16.msra.mxu0 %v1858_v3  ;;  %v1846_v12 = vor.u32 %v2558_v10, %v1845_v9  ;;  %v2606_v13 = vld [vmem:[#allocation5 + $0x218] sm:$0xf0]  ;;  %v1833_v18 = vld [vmem:[#allocation5 + $0x78] sm:$0xf] }
  0x18   :  { %v1941_v14 = vld [vmem:[#allocation5 + $0x150] sm:$0xf]  ;;  %v2582_v15 = vld [vmem:[#allocation5 + $0x158] sm:$0xf0]  ;;  %1263 = vmatpush.bf16.msra.mxu2 %v2050_v7  ;;  %v2038_v16 = vor.u32 %v2606_v13, %v2037_v11  ;;  %v2555_v19 = vld [vmem:[#allocation5 + $0x80] sm:$0xf0] }
  0x19   :  { %1250 = vmatpush.bf16.msra.mxu1 %v1954_v8  ;;  %v1942_v17 = vor.u32 %v2582_v15, %v1941_v14  ;;  %v2025_v20 = vld [vmem:[#allocation5 + $0x1f8] sm:$0xf]  ;;  %v2603_v21 = vld [vmem:[#allocation5 + $0x200] sm:$0xf0]  ;;  %v1834_v24 = vor.u32 %v2555_v19, %v1833_v18  ;;  %v2145_v25 = vld [vmem:[#allocation5 + $0x2e8] sm:$0xf] }
  0x1a   :  { %v1929_v22 = vld [vmem:[#allocation5 + $0x138] sm:$0xf]  ;;  %v2579_v23 = vld [vmem:[#allocation5 + $0x140] sm:$0xf0]  ;;  %v2633_v26 = vld [vmem:[#allocation5 + $0x2f0] sm:$0xf0]  ;;  %v2026_v27 = vor.u32 %v2603_v21, %v2025_v20 }
  0x1b   :  { %1238 = vmatpush.bf16.msra.mxu0 %v1846_v12  ;;  %v1930_v28 = vor.u32 %v2579_v23, %v1929_v22  ;;  %v1821_v29 = vld [vmem:[#allocation5 + $0x60] sm:$0xf]  ;;  %v2552_v30 = vld [vmem:[#allocation5 + $0x68] sm:$0xf0]  ;;  %v2146_v32 = vor.u32 %v2633_v26, %v2145_v25  ;;  %v2133_v36 = vld [vmem:[#allocation5 + $0x2d0] sm:$0xf] }
  0x1c   :  { %1264 = vmatpush.bf16.msra.mxu2 %v2038_v16  ;;  %v2013_v31 = vld [vmem:[#allocation5 + $0x1e0] sm:$0xf]  ;;  %v2600_v33 = vld [vmem:[#allocation5 + $0x1e8] sm:$0xf0]  ;;  %v2630_v37 = vld [vmem:[#allocation5 + $0x2d8] sm:$0xf0]  ;;  %v1822_v38 = vor.u32 %v2552_v30, %v1821_v29 }
  0x1d   :  { %1251 = vmatpush.bf16.msra.mxu1 %v1942_v17  ;;  %v1917_v34 = vld [vmem:[#allocation5 + $0x120] sm:$0xf]  ;;  %v2576_v35 = vld [vmem:[#allocation5 + $0x128] sm:$0xf0]  ;;  %1276 = vmatpush.bf16.msra.mxu3 %v2146_v32  ;;  %v1809_v39 = vld [vmem:[#allocation5 + $0x48] sm:$0xf]  ;;  %v2134_v41 = vor.u32 %v2630_v37, %v2133_v36  ;;  %v2014_v42 = vor.u32 %v2600_v33, %v2013_v31 }
  0x1e   :  { %v2549_v40 = vld [vmem:[#allocation5 + $0x50] sm:$0xf0]  ;;  %v1918_v43 = vor.u32 %v2576_v35, %v1917_v34  ;;  %v2001_v44 = vld [vmem:[#allocation5 + $0x1c8] sm:$0xf]  ;;  %v2121_v46 = vld [vmem:[#allocation5 + $0x2b8] sm:$0xf] }
  0x1f   :  { %1239 = vmatpush.bf16.msra.mxu0 %v1834_v24  ;;  %v2597_v45 = vld [vmem:[#allocation5 + $0x1d0] sm:$0xf0]  ;;  %v1905_v47 = vld [vmem:[#allocation5 + $0x108] sm:$0xf]  ;;  %v2627_v49 = vld [vmem:[#allocation5 + $0x2c0] sm:$0xf0]  ;;  %v1810_v51 = vor.u32 %v2549_v40, %v1809_v39 }
  0x20   :  { %1265 = vmatpush.bf16.msra.mxu2 %v2026_v27  ;;  %v2573_v48 = vld [vmem:[#allocation5 + $0x110] sm:$0xf0]  ;;  %v2122_v50 = vor.u32 %v2627_v49, %v2121_v46  ;;  %v2109_v52 = vld [vmem:[#allocation5 + $0x2a0] sm:$0xf]  ;;  %v2624_v53 = vld [vmem:[#allocation5 + $0x2a8] sm:$0xf0]  ;;  %v2002_v54 = vor.u32 %v2597_v45, %v2001_v44 }
  0x21   :  { %1252 = vmatpush.bf16.msra.mxu1 %v1930_v28  ;;  %1277 = vmatpush.bf16.msra.mxu3 %v2134_v41  ;;  %v1906_v55 = vor.u32 %v2573_v48, %v1905_v47  ;;  %v1797_v56 = vld [vmem:[#allocation5 + $0x30] sm:$0xf]  ;;  %v2546_v57 = vld [vmem:[#allocation5 + $0x38] sm:$0xf0]  ;;  %v2110_v62 = vor.u32 %v2624_v53, %v2109_v52  ;;  %v2097_v0 = vld [vmem:[#allocation5 + $0x288] sm:$0xf] }
  0x22   :  { %v1989_v58 = vld [vmem:[#allocation5 + $0x1b0] sm:$0xf]  ;;  %v2594_v59 = vld [vmem:[#allocation5 + $0x1b8] sm:$0xf0]  ;;  %v1798_v63 = vor.u32 %v2546_v57, %v1797_v56  ;;  %v2621_v1 = vld [vmem:[#allocation5 + $0x290] sm:$0xf0] }
  0x23   :  { %1240 = vmatpush.bf16.msra.mxu0 %v1822_v38  ;;  %v1893_v60 = vld [vmem:[#allocation5 + $0xf0] sm:$0xf]  ;;  %v2570_v61 = vld [vmem:[#allocation5 + $0xf8] sm:$0xf0]  ;;  %v1990_v2 = vor.u32 %v2594_v59, %v1989_v58  ;;  %v1785_v4 = vld [vmem:[#allocation5 + $0x18] sm:$0xf]  ;;  %v2098_v11 = vor.u32 %v2621_v1, %v2097_v0 }
  0x24   :  { %1266 = vmatpush.bf16.msra.mxu2 %v2014_v42  ;;  %v1894_v3 = vor.u32 %v2570_v61, %v1893_v60  ;;  %v2543_v5 = vld [vmem:[#allocation5 + $0x20] sm:$0xf0]  ;;  %v1977_v6 = vld [vmem:[#allocation5 + $0x198] sm:$0xf]  ;;  %v1773_v10 = vld [vmem:[#allocation5] sm:$0xf] }
  0x25   :  { %1253 = vmatpush.bf16.msra.mxu1 %v1918_v43  ;;  %1278 = vmatpush.bf16.msra.mxu3 %v2122_v50  ;;  %v2591_v7 = vld [vmem:[#allocation5 + $0x1a0] sm:$0xf0]  ;;  %v1881_v8 = vld [vmem:[#allocation5 + $0xd8] sm:$0xf]  ;;  %v1786_v12 = vor.u32 %v2543_v5, %v1785_v4  ;;  %v2540_v13 = vld [vmem:[#allocation5 + $0x8] sm:$0xf0] }
  0x26   :  { %v2567_v9 = vld [vmem:[#allocation5 + $0xe0] sm:$0xf0]  ;;  %v2085_v14 = vld [vmem:[#allocation5 + $0x270] sm:$0xf]  ;;  %v2618_v15 = vld [vmem:[#allocation5 + $0x278] sm:$0xf0]  ;;  %v1978_v16 = vor.u32 %v2591_v7, %v1977_v6  ;;  %v1774_v28 = vor.u32 %v2540_v13, %v1773_v10 }
  0x27   :  { %1241 = vmatpush.bf16.msra.mxu0 %v1810_v51  ;;  %v1882_v17 = vor.u32 %v2567_v9, %v1881_v8  ;;  %v1965_v18 = vld [vmem:[#allocation5 + $0x180] sm:$0xf]  ;;  %v2588_v19 = vld [vmem:[#allocation5 + $0x188] sm:$0xf0]  ;;  %v2241_v20 = vld [vmem:[#allocation5 + $0x3a8] sm:$0xf]  ;;  %v2086_v27 = vor.u32 %v2618_v15, %v2085_v14 }
  0x28   :  { %1267 = vmatpush.bf16.msra.mxu2 %v2002_v54  ;;  %v2657_v21 = vld [vmem:[#allocation5 + $0x3b0] sm:$0xf0]  ;;  %v2433_v22 = vld [vmem:[#allocation5 + $0x528] sm:$0xf]  ;;  %v1869_v24 = vld [vmem:[#allocation5 + $0xc0] sm:$0xf]  ;;  %v1966_v32 = vor.u32 %v2588_v19, %v1965_v18 }
  0x29   :  { %1254 = vmatpush.bf16.msra.mxu1 %v1906_v55  ;;  %1279 = vmatpush.bf16.msra.mxu3 %v2110_v62  ;;  %v2705_v23 = vld [vmem:[#allocation5 + $0x530] sm:$0xf0]  ;;  %v2564_v25 = vld [vmem:[#allocation5 + $0xc8] sm:$0xf0]  ;;  %v2337_v26 = vld [vmem:[#allocation5 + $0x468] sm:$0xf]  ;;  %v2242_v33 = vor.u32 %v2657_v21, %v2241_v20 }
  0x2a   :  { %v2681_v29 = vld [vmem:[#allocation5 + $0x470] sm:$0xf0]  ;;  %v2073_v30 = vld [vmem:[#allocation5 + $0x258] sm:$0xf]  ;;  %v2615_v31 = vld [vmem:[#allocation5 + $0x260] sm:$0xf0]  ;;  %v2434_v35 = vor.u32 %v2705_v23, %v2433_v22  ;;  %v1870_v36 = vor.u32 %v2564_v25, %v1869_v24 }
  0x2b   :  { %1242 = vmatpush.bf16.msra.mxu0 %v1798_v63  ;;  %v2229_v34 = vld [vmem:[#allocation5 + $0x390] sm:$0xf]  ;;  %v2654_v37 = vld [vmem:[#allocation5 + $0x398] sm:$0xf0]  ;;  %v2338_v40 = vor.u32 %v2681_v29, %v2337_v26  ;;  %v2074_v43 = vor.u32 %v2615_v31, %v2073_v30  ;;  %v2061_v45 = vld [vmem:[#allocation5 + $0x240] sm:$0xf] }
  0x2c   :  { %1268 = vmatpush.bf16.msra.mxu2 %v1990_v2  ;;  %v2421_v38 = vld [vmem:[#allocation5 + $0x510] sm:$0xf]  ;;  %v2702_v39 = vld [vmem:[#allocation5 + $0x518] sm:$0xf0]  ;;  %v2612_v46 = vld [vmem:[#allocation5 + $0x248] sm:$0xf0]  ;;  %v2230_v49 = vor.u32 %v2654_v37, %v2229_v34 }
  0x2d   :  { %1255 = vmatpush.bf16.msra.mxu1 %v1894_v3  ;;  %1280 = vmatpush.bf16.msra.mxu3 %v2098_v11  ;;  %v2325_v41 = vld [vmem:[#allocation5 + $0x450] sm:$0xf]  ;;  %v2678_v42 = vld [vmem:[#allocation5 + $0x458] sm:$0xf0]  ;;  %v80_v48 = vld [vmem:[#allocation2] sm:$0xff]  ;;  %v2422_v54 = vor.u32 %v2702_v39, %v2421_v38  ;;  %v2062_v62 = vor.u32 %v2612_v46, %v2061_v45  ;;  %s2877_s15 = smov [#allocation10]  }
  0x2e   :  { %v81_v44 = vld [vmem:[#allocation2 + $0x8] sm:$0xff]  ;;  %v1859_v51 = vld [vmem:[#allocation5 + $0xb4] sm:$0xf0]  ;;  %v320_v52 = vunpack.c.l.b16 %v80_v48  ;;  %v321_v53 = vunpack.c.h.b16 %v80_v48  ;;  %v2326_v55 = vor.u32 %v2678_v42, %v2325_v41  ;;  %v2651_v57 = vld [vmem:[#allocation5 + $0x380] sm:$0xf0]  ;;  %s1757_s16 = sshll.u32 %s2877_s15, 4  ;;  %s1758_s16 = int_to_ptr.vmem [resolvable:$true] %s1757_s16 }
  0x2f   :  { %1243 = vmatpush.bf16.msra.mxu0 %v1786_v12  ;;  %v322_v47 = vunpack.c.l.b16 %v81_v44  ;;  %v2560_v50 = vld [vmem:[#allocation5 + $0xac] sm:$0xf]  ;;  %v2217_v56 = vld [vmem:[#allocation5 + $0x378] sm:$0xf]  ;;  %v323_v59 = vunpack.c.h.b16 %v81_v44  ;;  %v2699_v61 = vld [vmem:[#allocation5 + $0x500] sm:$0xf0] }
  0x30   :  { %1269 = vmatpush.bf16.msra.mxu2 %v1978_v16  ;;  %v2409_v60 = vld [vmem:[#allocation5 + $0x4f8] sm:$0xf]  ;;  %v2922_v63 = vpack.c.b16 %v320_v52, %v320_v52  ;;  %v2924_v0 = vpack.c.b16 %v321_v53, %v321_v53  ;;  %v2675_v2 = vld [vmem:[#allocation5 + $0x440] sm:$0xf0]  ;;  %v1862_v3 = vor.u32 %v2560_v50, %v1859_v51  ;;  %v2218_v4 = vor.u32 %v2651_v57, %v2217_v56  ;;  %v2557_v5 = vld [vmem:[#allocation5 + $0x94] sm:$0xf] }
  0x31   :  { %1256 = vmatpush.bf16.msra.mxu1 %v1882_v17  ;;  %1281 = vmatpush.bf16.msra.mxu3 %v2086_v27  ;;  %v2920_v58 = vpack.c.b16 %v322_v47, %v322_v47  ;;  %v2313_v1 = vld [vmem:[#allocation5 + $0x438] sm:$0xf]  ;;  %v1847_v6 = vld [vmem:[#allocation5 + $0x9c] sm:$0xf0]  ;;  %v2410_v7 = vor.u32 %v2699_v61, %v2409_v60  ;;  %v2648_v9 = vld [vmem:[#allocation5 + $0x368] sm:$0xf0]  ;;  %v2929_v10 = vpack.c.b16 %v323_v59, %v323_v59 }
  0x32   :  { %v2205_v8 = vld [vmem:[#allocation5 + $0x360] sm:$0xf]  ;;  %v2314_v11 = vor.u32 %v2675_v2, %v2313_v1  ;;  %v2696_v13 = vld [vmem:[#allocation5 + $0x4e8] sm:$0xf0]  ;;  %v1850_v16 = vor.u32 %v2557_v5, %v1847_v6  ;;  %v2554_v18 = vld [vmem:[#allocation5 + $0x7c] sm:$0xf] }
  0x33   :  { %1244 = vmatpush.bf16.msra.mxu0 %v1774_v28  ;;  %v2397_v12 = vld [vmem:[#allocation5 + $0x4e0] sm:$0xf]  ;;  %v2672_v15 = vld [vmem:[#allocation5 + $0x428] sm:$0xf0]  ;;  %v2206_v17 = vor.u32 %v2648_v9, %v2205_v8  ;;  %v1835_v19 = vld [vmem:[#allocation5 + $0x84] sm:$0xf0] }
  0x34   :  { %1270 = vmatpush.bf16.msra.mxu2 %v1966_v32  ;;  %v2301_v14 = vld [vmem:[#allocation5 + $0x420] sm:$0xf]  ;;  %v2398_v20 = vor.u32 %v2696_v13, %v2397_v12  ;;  %v2193_v21 = vld [vmem:[#allocation5 + $0x348] sm:$0xf]  ;;  %v2645_v22 = vld [vmem:[#allocation5 + $0x350] sm:$0xf0]  ;;  %v1838_v28 = vor.u32 %v2554_v18, %v1835_v19 }
  0x35   :  { %1257 = vmatpush.bf16.msra.mxu1 %v1870_v36  ;;  %1282 = vmatpush.bf16.msra.mxu3 %v2074_v43  ;;  %v2302_v23 = vor.u32 %v2672_v15, %v2301_v14  ;;  %v2385_v24 = vld [vmem:[#allocation5 + $0x4c8] sm:$0xf]  ;;  %v2693_v25 = vld [vmem:[#allocation5 + $0x4d0] sm:$0xf0]  ;;  %v2194_v29 = vor.u32 %v2645_v22, %v2193_v21  ;;  %v2551_v30 = vld [vmem:[#allocation5 + $0x64] sm:$0xf] }
  0x36   :  { %1245 = vmatmul.bf16.vlgmr.msra.gmra.mxu0 %v2922_v63  ;;  %v2289_v26 = vld [vmem:[#allocation5 + $0x408] sm:$0xf]  ;;  %v2669_v27 = vld [vmem:[#allocation5 + $0x410] sm:$0xf0]  ;;  %v1823_v31 = vld [vmem:[#allocation5 + $0x6c] sm:$0xf0]  ;;  %v2386_v32 = vor.u32 %v2693_v25, %v2385_v24 }
  0x37   :  { %1289 = vmatpush.bf16.msrb.mxu0 %v2242_v33  ;;  %1271 = vmatmul.bf16.vlgmr.msra.gmra.mxu2 %v2920_v58  ;;  %v2181_v33 = vld [vmem:[#allocation5 + $0x330] sm:$0xf]  ;;  %v2642_v34 = vld [vmem:[#allocation5 + $0x338] sm:$0xf0]  ;;  %v2548_v42 = vld [vmem:[#allocation5 + $0x4c] sm:$0xf] }
  0x38   :  { %1315 = vmatpush.bf16.msrb.mxu2 %v2434_v35  ;;  %1258 = vmatmul.bf16.vlgmr.msra.gmra.mxu1 %v2924_v0  ;;  %v2290_v35 = vor.u32 %v2669_v27, %v2289_v26  ;;  %v2373_v36 = vld [vmem:[#allocation5 + $0x4b0] sm:$0xf]  ;;  %v2690_v37 = vld [vmem:[#allocation5 + $0x4b8] sm:$0xf0]  ;;  %v2182_v41 = vor.u32 %v2642_v34, %v2181_v33  ;;  %v1811_v43 = vld [vmem:[#allocation5 + $0x54] sm:$0xf0] }
  0x39   :  { %1302 = vmatpush.bf16.msrb.mxu1 %v2338_v40  ;;  %1283 = vmatpush.bf16.msra.mxu3 %v2062_v62  ;;  %v2277_v38 = vld [vmem:[#allocation5 + $0x3f0] sm:$0xf]  ;;  %v2666_v39 = vld [vmem:[#allocation5 + $0x3f8] sm:$0xf0]  ;;  %v1826_v40 = vor.u32 %v2551_v30, %v1823_v31  ;;  %v2374_v44 = vor.u32 %v2690_v37, %v2373_v36  ;;  %v2169_v45 = vld [vmem:[#allocation5 + $0x318] sm:$0xf] }
  0x3a   :  { %v2639_v46 = vld [vmem:[#allocation5 + $0x320] sm:$0xf0]  ;;  %v2278_v47 = vor.u32 %v2666_v39, %v2277_v38  ;;  %v2361_v48 = vld [vmem:[#allocation5 + $0x498] sm:$0xf]  ;;  %v2157_v52 = vld [vmem:[#allocation5 + $0x300] sm:$0xf] }
  0x3b   :  { %1290 = vmatpush.bf16.msrb.mxu0 %v2230_v49  ;;  %v2687_v49 = vld [vmem:[#allocation5 + $0x4a0] sm:$0xf0]  ;;  %v2265_v50 = vld [vmem:[#allocation5 + $0x3d8] sm:$0xf]  ;;  %v2636_v53 = vld [vmem:[#allocation5 + $0x308] sm:$0xf0] }
  0x3c   :  { %1316 = vmatpush.bf16.msrb.mxu2 %v2422_v54  ;;  %1284 = vmatmul.bf16.vlgmr.msra.gmra.mxu3 %v2929_v10  ;;  %v2663_v51 = vld [vmem:[#allocation5 + $0x3e0] sm:$0xf0]  ;;  %v1814_v54 = vor.u32 %v2548_v42, %v1811_v43  ;;  %v82_v56 = vld [vmem:[#allocation2 + $0x10] sm:$0xff]  ;;  %v1799_v59 = vld [vmem:[#allocation5 + $0x3c] sm:$0xf0]  ;;  %v2362_v60 = vor.u32 %v2687_v49, %v2361_v48  ;;  %v2158_v12 = vor.u32 %v2636_v53, %v2157_v52  ;;  %s1759_s19 = sshll.u32 %s2971_s5, 4  ;;  %s1760_s19 = int_to_ptr.hbm [resolvable:$true] %s1759_s19 }
  0x3d   :  { %1303 = vmatpush.bf16.msrb.mxu1 %v2326_v55  ;;  %1328 = vmatpush.bf16.msrb.mxu3 %v1862_v3  ;;  %v2170_v55 = vor.u32 %v2639_v46, %v2169_v45  ;;  %v2545_v57 = vld [vmem:[#allocation5 + $0x34] sm:$0xf]  ;;  %v2349_v61 = vld [vmem:[#allocation5 + $0x480] sm:$0xf]  ;;  %v2684_v62 = vld [vmem:[#allocation5 + $0x488] sm:$0xf0]  ;;  %v2266_v2 = vor.u32 %v2663_v51, %v2265_v50  ;;  %v325_v18 = vunpack.c.h.b16 %v82_v56 }
  0x3e   :  { %v83_v1 = vld [vmem:[#allocation2 + $0x18] sm:$0xf]  ;;  %v2584_v3 = vld [vmem:[#allocation5 + $0x16c] sm:$0xf]  ;;  %v2253_v5 = vld [vmem:[#allocation5 + $0x3c0] sm:$0xf]  ;;  %v1802_v8 = vor.u32 %v2545_v57, %v1799_v59 }
  0x3f   :  { %1291 = vmatpush.bf16.msrb.mxu0 %v2218_v4  ;;  %v1955_v4 = vld [vmem:[#allocation5 + $0x174] sm:$0xf0]  ;;  %v2660_v6 = vld [vmem:[#allocation5 + $0x3c8] sm:$0xf0]  ;;  %v326_v13 = vunpack.c.l.b16 %v83_v1  ;;  %v2542_v19 = vld [vmem:[#allocation5 + $0x1c] sm:$0xf]  ;;  %v2936_v34 = vpack.c.b16 %v325_v18, %v325_v18 }
  0x40   :  { %1317 = vmatpush.bf16.msrb.mxu2 %v2410_v7  ;;  %v324_v7 = vunpack.c.l.b16 %v82_v56  ;;  %v2632_v9 = vld [vmem:[#allocation5 + $0x2ec] sm:$0xf]  ;;  %v2051_v15 = vld [vmem:[#allocation5 + $0x234] sm:$0xf0]  ;;  %v2254_v21 = vor.u32 %v2660_v6, %v2253_v5  ;;  %v2581_v22 = vld [vmem:[#allocation5 + $0x154] sm:$0xf] }
  0x41   :  { %1304 = vmatpush.bf16.msrb.mxu1 %v2314_v11  ;;  %1329 = vmatpush.bf16.msrb.mxu3 %v1850_v16  ;;  %v2147_v11 = vld [vmem:[#allocation5 + $0x2f4] sm:$0xf0]  ;;  %v2608_v14 = vld [vmem:[#allocation5 + $0x22c] sm:$0xf]  ;;  %v2350_v16 = vor.u32 %v2684_v62, %v2349_v61  ;;  %v2629_v27 = vld [vmem:[#allocation5 + $0x2d4] sm:$0xf] }
  0x42   :  { %v2150_v24 = vor.u32 %v2632_v9, %v2147_v11  ;;  %v2054_v25 = vor.u32 %v2608_v14, %v2051_v15  ;;  %v2932_v26 = vpack.c.b16 %v324_v7, %v324_v7  ;;  %v2605_v30 = vld [vmem:[#allocation5 + $0x214] sm:$0xf]  ;;  %v2039_v31 = vld [vmem:[#allocation5 + $0x21c] sm:$0xf0]  ;;  %v2539_v36 = vld [vmem:[#allocation5 + $0x4] sm:$0xf] }
  0x43   :  { %1292 = vmatpush.bf16.msrb.mxu0 %v2206_v17  ;;  %v1958_v17 = vor.u32 %v2584_v3, %v1955_v4  ;;  %v1775_v37 = vld [vmem:[#allocation5 + $0xc] sm:$0xf0]  ;;  %v1931_v38 = vld [vmem:[#allocation5 + $0x144] sm:$0xf0]  ;;  %v2656_v39 = vld [vmem:[#allocation5 + $0x3ac] sm:$0xf]  ;;  %v2042_v42 = vor.u32 %v2605_v30, %v2039_v31 }
  0x44   :  { %1318 = vmatpush.bf16.msrb.mxu2 %v2398_v20  ;;  %v1787_v20 = vld [vmem:[#allocation5 + $0x24] sm:$0xf0]  ;;  %v2626_v43 = vld [vmem:[#allocation5 + $0x2bc] sm:$0xf]  ;;  %v2575_v49 = vld [vmem:[#allocation5 + $0x124] sm:$0xf] }
  0x45   :  { %1305 = vmatpush.bf16.msrb.mxu1 %v2302_v23  ;;  %1330 = vmatpush.bf16.msrb.mxu3 %v1838_v28  ;;  %v1943_v23 = vld [vmem:[#allocation5 + $0x15c] sm:$0xf0]  ;;  %v2602_v45 = vld [vmem:[#allocation5 + $0x1fc] sm:$0xf]  ;;  %v2027_v46 = vld [vmem:[#allocation5 + $0x204] sm:$0xf0] }
  0x46   :  { %v2135_v28 = vld [vmem:[#allocation5 + $0x2dc] sm:$0xf0]  ;;  %v1946_v33 = vor.u32 %v2581_v22, %v1943_v23  ;;  %v1919_v51 = vld [vmem:[#allocation5 + $0x12c] sm:$0xf0]  ;;  %v2653_v52 = vld [vmem:[#allocation5 + $0x394] sm:$0xf] }
  0x47   :  { %1293 = vmatpush.bf16.msrb.mxu0 %v2194_v29  ;;  %v2934_v29 = vpack.c.b16 %v326_v13, %v326_v13  ;;  %v2231_v53 = vld [vmem:[#allocation5 + $0x39c] sm:$0xf0]  ;;  %v2623_v56 = vld [vmem:[#allocation5 + $0x2a4] sm:$0xf]  ;;  %v2111_v57 = vld [vmem:[#allocation5 + $0x2ac] sm:$0xf0]  ;;  %v1922_v61 = vor.u32 %v2575_v49, %v1919_v51 }
  0x48   :  { %1319 = vmatpush.bf16.msrb.mxu2 %v2386_v32  ;;  %v1790_v32 = vor.u32 %v2542_v19, %v1787_v20  ;;  %v2599_v59 = vld [vmem:[#allocation5 + $0x1e4] sm:$0xf]  ;;  %v2572_v62 = vld [vmem:[#allocation5 + $0x10c] sm:$0xf]  ;;  %v2234_v1 = vor.u32 %v2653_v52, %v2231_v53  ;;  %v2650_v3 = vld [vmem:[#allocation5 + $0x37c] sm:$0xf]  ;;  %v2114_v5 = vor.u32 %v2623_v56, %v2111_v57 }
  0x49   :  { %1306 = vmatpush.bf16.msrb.mxu1 %v2290_v35  ;;  %1331 = vmatpush.bf16.msrb.mxu3 %v1826_v40  ;;  %v2578_v35 = vld [vmem:[#allocation5 + $0x13c] sm:$0xf]  ;;  %v2243_v40 = vld [vmem:[#allocation5 + $0x3b4] sm:$0xf0]  ;;  %v2219_v4 = vld [vmem:[#allocation5 + $0x384] sm:$0xf0] }
  0x4a   :  { %v1934_v48 = vor.u32 %v2578_v35, %v1931_v38  ;;  %v2246_v50 = vor.u32 %v2656_v39, %v2243_v40  ;;  %v2620_v7 = vld [vmem:[#allocation5 + $0x28c] sm:$0xf]  ;;  %v2003_v11 = vld [vmem:[#allocation5 + $0x1d4] sm:$0xf0]  ;;  %v2569_v13 = vld [vmem:[#allocation5 + $0xf4] sm:$0xf]  ;;  %v2222_v15 = vor.u32 %v2650_v3, %v2219_v4 }
  0x4b   :  { %1294 = vmatpush.bf16.msrb.mxu0 %v2182_v41  ;;  %v2138_v41 = vor.u32 %v2629_v27, %v2135_v28  ;;  %v2596_v9 = vld [vmem:[#allocation5 + $0x1cc] sm:$0xf]  ;;  %v1895_v14 = vld [vmem:[#allocation5 + $0xfc] sm:$0xf0]  ;;  %v2617_v20 = vld [vmem:[#allocation5 + $0x274] sm:$0xf] }
  0x4c   :  { %1320 = vmatpush.bf16.msrb.mxu2 %v2374_v44  ;;  %v2123_v44 = vld [vmem:[#allocation5 + $0x2c4] sm:$0xf0]  ;;  %v2006_v19 = vor.u32 %v2596_v9, %v2003_v11  ;;  %v2593_v22 = vld [vmem:[#allocation5 + $0x1b4] sm:$0xf]  ;;  %v1991_v23 = vld [vmem:[#allocation5 + $0x1bc] sm:$0xf0] }
  0x4d   :  { %1307 = vmatpush.bf16.msrb.mxu1 %v2278_v47  ;;  %1332 = vmatpush.bf16.msrb.mxu3 %v1814_v54  ;;  %v1778_v47 = vor.u32 %v2539_v36, %v1775_v37  ;;  %v2126_v54 = vor.u32 %v2626_v43, %v2123_v44  ;;  %v1883_v28 = vld [vmem:[#allocation5 + $0xe4] sm:$0xf0]  ;;  %v2644_v30 = vld [vmem:[#allocation5 + $0x34c] sm:$0xf]  ;;  %v2195_v31 = vld [vmem:[#allocation5 + $0x354] sm:$0xf0] }
  0x4e   :  { %v2614_v35 = vld [vmem:[#allocation5 + $0x25c] sm:$0xf]  ;;  %v2075_v36 = vld [vmem:[#allocation5 + $0x264] sm:$0xf0]  ;;  %v2563_v40 = vld [vmem:[#allocation5 + $0xc4] sm:$0xf] }
  0x4f   :  { %1295 = vmatpush.bf16.msrb.mxu0 %v2170_v55  ;;  %v2030_v55 = vor.u32 %v2602_v45, %v2027_v46  ;;  %v2590_v37 = vld [vmem:[#allocation5 + $0x19c] sm:$0xf]  ;;  %v1979_v38 = vld [vmem:[#allocation5 + $0x1a4] sm:$0xf0]  ;;  %v2680_v43 = vld [vmem:[#allocation5 + $0x46c] sm:$0xf] }
  0x50   :  { %1321 = vmatpush.bf16.msrb.mxu2 %v2362_v60  ;;  %v2015_v60 = vld [vmem:[#allocation5 + $0x1ec] sm:$0xf0]  ;;  %v2339_v44 = vld [vmem:[#allocation5 + $0x474] sm:$0xf0]  ;;  %v2641_v45 = vld [vmem:[#allocation5 + $0x334] sm:$0xf] }
  0x51   :  { %1308 = vmatpush.bf16.msrb.mxu1 %v2266_v2  ;;  %1333 = vmatpush.bf16.msrb.mxu3 %v1802_v8  ;;  %v1907_v2 = vld [vmem:[#allocation5 + $0x114] sm:$0xf0]  ;;  %v2018_v6 = vor.u32 %v2599_v59, %v2015_v60  ;;  %v2183_v46 = vld [vmem:[#allocation5 + $0x33c] sm:$0xf0]  ;;  %v2587_v49 = vld [vmem:[#allocation5 + $0x184] sm:$0xf]  ;;  %v2342_v60 = vor.u32 %v2680_v43, %v2339_v44 }
  0x52   :  { %v2099_v8 = vld [vmem:[#allocation5 + $0x294] sm:$0xf0]  ;;  %v2063_v51 = vld [vmem:[#allocation5 + $0x24c] sm:$0xf0]  ;;  %v2704_v56 = vld [vmem:[#allocation5 + $0x52c] sm:$0xf]  ;;  %v2186_v59 = vor.u32 %v2641_v45, %v2183_v46 }
  0x53   :  { %1296 = vmatpush.bf16.msrb.mxu0 %v2158_v12  ;;  %v1910_v12 = vor.u32 %v2572_v62, %v1907_v2  ;;  %v2102_v18 = vor.u32 %v2620_v7, %v2099_v8  ;;  %v1967_v52 = vld [vmem:[#allocation5 + $0x18c] sm:$0xf0]  ;;  %v2435_v57 = vld [vmem:[#allocation5 + $0x534] sm:$0xf0]  ;;  %v2171_v62 = vld [vmem:[#allocation5 + $0x324] sm:$0xf0] }
  0x54   :  { %1322 = vmatpush.bf16.msrb.mxu2 %v2350_v16  ;;  %v2647_v16 = vld [vmem:[#allocation5 + $0x364] sm:$0xf]  ;;  %v1865_v53 = vld [vmem:[#allocation5 + $0xb0] sm:$0xf]  ;;  %v1970_v2 = vor.u32 %v2587_v49, %v1967_v52  ;;  %v2677_v3 = vld [vmem:[#allocation5 + $0x454] sm:$0xf] }
  0x55   :  { %1309 = vmatpush.bf16.msrb.mxu1 %v2254_v21  ;;  %1334 = vmatpush.bf16.msrb.mxu3 %v1790_v32  ;;  %v2087_v21 = vld [vmem:[#allocation5 + $0x27c] sm:$0xf0]  ;;  %v1853_v7 = vld [vmem:[#allocation5 + $0x98] sm:$0xf]  ;;  %v2559_v8 = vld [vmem:[#allocation5 + $0xa0] sm:$0xf0] }
  0x56   :  { %1297 = vmatmul.bf16.vlgmr.msrb.gmra.mxu0 %v2932_v26  ;;  %v2090_v32 = vor.u32 %v2617_v20, %v2087_v21  ;;  %v2327_v4 = vld [vmem:[#allocation5 + $0x45c] sm:$0xf0]  ;;  %v2701_v9 = vld [vmem:[#allocation5 + $0x514] sm:$0xf]  ;;  %v1854_v20 = vor.u32 %v2559_v8, %v1853_v7  ;;  %v2668_v43 = vld [vmem:[#allocation5 + $0x40c] sm:$0xf] }
  0x57   :  { %1341 = vmatpush.bf16.msra.mxu0 %v1958_v17  ;;  %1323 = vmatmul.bf16.vlgmr.msrb.gmra.mxu2 %v2934_v29  ;;  %v2207_v17 = vld [vmem:[#allocation5 + $0x36c] sm:$0xf0]  ;;  %v2423_v11 = vld [vmem:[#allocation5 + $0x51c] sm:$0xf0]  ;;  %v2291_v45 = vld [vmem:[#allocation5 + $0x414] sm:$0xf0] }
  0x58   :  { %1367 = vmatpush.bf16.msra.mxu2 %v2150_v24  ;;  %1310 = vmatmul.bf16.vlgmr.msrb.gmra.mxu1 %v2936_v34  ;;  %v1898_v24 = vor.u32 %v2569_v13, %v1895_v14  ;;  %v2210_v27 = vor.u32 %v2647_v16, %v2207_v17  ;;  %v2330_v13 = vor.u32 %v2677_v3, %v2327_v4  ;;  %v2674_v14 = vld [vmem:[#allocation5 + $0x43c] sm:$0xf]  ;;  %v2159_v16 = vld [vmem:[#allocation5 + $0x30c] sm:$0xf0]  ;;  %v2315_v17 = vld [vmem:[#allocation5 + $0x444] sm:$0xf0] }
  0x59   :  { %1354 = vmatpush.bf16.msra.mxu1 %v2054_v25  ;;  %1335 = vmatpush.bf16.msrb.mxu3 %v1778_v47  ;;  %v2566_v25 = vld [vmem:[#allocation5 + $0xdc] sm:$0xf]  ;;  %v2078_v47 = vor.u32 %v2614_v35, %v2075_v36  ;;  %v2426_v21 = vor.u32 %v2701_v9, %v2423_v11  ;;  %v2583_v35 = vld [vmem:[#allocation5 + $0x160] sm:$0xf0]  ;;  %v1937_v46 = vld [vmem:[#allocation5 + $0x140] sm:$0xf] }
  0x5a   :  { %v1886_v39 = vor.u32 %v2566_v25, %v1883_v28  ;;  %v2411_v25 = vld [vmem:[#allocation5 + $0x504] sm:$0xf0]  ;;  %v2318_v28 = vor.u32 %v2674_v14, %v2315_v17  ;;  %v2692_v52 = vld [vmem:[#allocation5 + $0x4cc] sm:$0xf]  ;;  %v2689_v3 = vld [vmem:[#allocation5 + $0x4b4] sm:$0xf] }
  0x5b   :  { %1342 = vmatpush.bf16.msra.mxu0 %v1946_v33  ;;  %v1994_v33 = vor.u32 %v2593_v22, %v1991_v23  ;;  %v1841_v22 = vld [vmem:[#allocation5 + $0x80] sm:$0xf]  ;;  %v2556_v23 = vld [vmem:[#allocation5 + $0x88] sm:$0xf0]  ;;  %v2267_v8 = vld [vmem:[#allocation5 + $0x3e4] sm:$0xf0] }
  0x5c   :  { %1368 = vmatpush.bf16.msra.mxu2 %v2138_v41  ;;  %1336 = vmatmul.bf16.vlgmr.msrb.gmra.mxu3 %v2922_v63  ;;  %v1871_v41 = vld [vmem:[#allocation5 + $0xcc] sm:$0xf0]  ;;  %v1842_v36 = vor.u32 %v2556_v23, %v1841_v22  ;;  %v2375_v4 = vld [vmem:[#allocation5 + $0x4bc] sm:$0xf0]  ;;  %v2574_v11 = vld [vmem:[#allocation5 + $0x118] sm:$0xf0] }
  0x5d   :  { %1355 = vmatpush.bf16.msra.mxu1 %v2042_v42  ;;  %1380 = vmatpush.bf16.msra.mxu3 %v2246_v50  ;;  %v2198_v42 = vor.u32 %v2644_v30, %v2195_v31  ;;  %v2611_v50 = vld [vmem:[#allocation5 + $0x244] sm:$0xf]  ;;  %v1913_v9 = vld [vmem:[#allocation5 + $0x110] sm:$0xf]  ;;  %v1793_v14 = vld [vmem:[#allocation5 + $0x20] sm:$0xf] }
  0x5e   :  { %v2671_v30 = vld [vmem:[#allocation5 + $0x424] sm:$0xf]  ;;  %v2363_v17 = vld [vmem:[#allocation5 + $0x4a4] sm:$0xf0]  ;;  %v2057_v22 = vld [vmem:[#allocation5 + $0x230] sm:$0xf] }
  0x5f   :  { %1343 = vmatpush.bf16.msra.mxu0 %v1934_v48  ;;  %v1982_v48 = vor.u32 %v2590_v37, %v1979_v38  ;;  %v1829_v38 = vld [vmem:[#allocation5 + $0x68] sm:$0xf]  ;;  %v2610_v23 = vld [vmem:[#allocation5 + $0x238] sm:$0xf0] }
  0x60   :  { %1369 = vmatpush.bf16.msra.mxu2 %v2126_v54  ;;  %v2562_v54 = vld [vmem:[#allocation5 + $0xb8] sm:$0xf0] }
  0x61   :  { %1356 = vmatpush.bf16.msra.mxu1 %v2030_v55  ;;  %1381 = vmatpush.bf16.msra.mxu3 %v2234_v1  ;;  %v1874_v55 = vor.u32 %v2563_v40, %v1871_v41  ;;  %v2066_v1 = vor.u32 %v2611_v50, %v2063_v51  ;;  %v2695_v40 = vld [vmem:[#allocation5 + $0x4e4] sm:$0xf]  ;;  %v2399_v41 = vld [vmem:[#allocation5 + $0x4ec] sm:$0xf0]  ;;  %v2550_v51 = vld [vmem:[#allocation5 + $0x58] sm:$0xf0] }
  0x62   :  { %v2402_v49 = vor.u32 %v2695_v40, %v2399_v41  ;;  %v1817_v50 = vld [vmem:[#allocation5 + $0x50] sm:$0xf]  ;;  %v2634_v40 = vld [vmem:[#allocation5 + $0x2f8] sm:$0xf0]  ;;  %v2058_v41 = vor.u32 %v2610_v23, %v2057_v22 }
  0x63   :  { %1344 = vmatpush.bf16.msra.mxu0 %v1922_v61  ;;  %v2638_v61 = vld [vmem:[#allocation5 + $0x31c] sm:$0xf] }
  0x64   :  { %1370 = vmatpush.bf16.msra.mxu2 %v2114_v5  ;;  %v1866_v5 = vor.u32 %v2562_v54, %v1865_v53  ;;  %v2387_v53 = vld [vmem:[#allocation5 + $0x4d4] sm:$0xf0]  ;;  %v2294_v54 = vor.u32 %v2668_v43, %v2291_v45  ;;  %v2568_v43 = vld [vmem:[#allocation5 + $0xe8] sm:$0xf0]  ;;  %v2598_v23 = vld [vmem:[#allocation5 + $0x1d8] sm:$0xf0] }
  0x65   :  { %1357 = vmatpush.bf16.msra.mxu1 %v2018_v6  ;;  %1382 = vmatpush.bf16.msra.mxu3 %v2222_v15  ;;  %v2438_v6 = vor.u32 %v2704_v56, %v2435_v57  ;;  %v2635_v15 = vld [vmem:[#allocation5 + $0x304] sm:$0xf]  ;;  %v2279_v57 = vld [vmem:[#allocation5 + $0x3fc] sm:$0xf0] }
  0x67   :  { %1345 = vmatpush.bf16.msra.mxu0 %v1910_v12  ;;  %v2174_v12 = vor.u32 %v2638_v61, %v2171_v62  ;;  %v1818_v61 = vor.u32 %v2550_v51, %v1817_v50  ;;  %v2390_v62 = vor.u32 %v2692_v52, %v2387_v53  ;;  %v2237_v50 = vld [vmem:[#allocation5 + $0x398] sm:$0xf]  ;;  %v2655_v51 = vld [vmem:[#allocation5 + $0x3a0] sm:$0xf0] }
  0x68   :  { %1371 = vmatpush.bf16.msra.mxu2 %v2102_v18  ;;  %v1961_v18 = vld [vmem:[#allocation5 + $0x170] sm:$0xf]  ;;  %v2141_v53 = vld [vmem:[#allocation5 + $0x2d8] sm:$0xf] }
  0x69   :  { %1358 = vmatpush.bf16.msra.mxu1 %v2006_v19  ;;  %1383 = vmatpush.bf16.msra.mxu3 %v2210_v27  ;;  %v2586_v19 = vld [vmem:[#allocation5 + $0x178] sm:$0xf0]  ;;  %v2162_v27 = vor.u32 %v2635_v15, %v2159_v16  ;;  %v2544_v15 = vld [vmem:[#allocation5 + $0x28] sm:$0xf0] }
  0x6a   :  { %v1962_v31 = vor.u32 %v2586_v19, %v1961_v18  ;;  %v2686_v16 = vld [vmem:[#allocation5 + $0x49c] sm:$0xf]  ;;  %v2659_v19 = vld [vmem:[#allocation5 + $0x3c4] sm:$0xf] }
  0x6b   :  { %1346 = vmatpush.bf16.msra.mxu0 %v1898_v24  ;;  %v2698_v24 = vld [vmem:[#allocation5 + $0x4fc] sm:$0xf] }
  0x6c   :  { %1372 = vmatpush.bf16.msra.mxu2 %v2090_v32  ;;  %v2303_v32 = vld [vmem:[#allocation5 + $0x42c] sm:$0xf0]  ;;  %v2414_v37 = vor.u32 %v2698_v24, %v2411_v25  ;;  %v1901_v24 = vld [vmem:[#allocation5 + $0xf8] sm:$0xf]  ;;  %v2571_v25 = vld [vmem:[#allocation5 + $0x100] sm:$0xf0] }
  0x6d   :  { %1359 = vmatpush.bf16.msra.mxu1 %v1994_v33  ;;  %1384 = vmatpush.bf16.msra.mxu3 %v2198_v42  ;;  %v1949_v33 = vld [vmem:[#allocation5 + $0x158] sm:$0xf]  ;;  %v2306_v42 = vor.u32 %v2671_v30, %v2303_v32  ;;  %v2683_v30 = vld [vmem:[#allocation5 + $0x484] sm:$0xf]  ;;  %v2541_v32 = vld [vmem:[#allocation5 + $0x10] sm:$0xf0] }
  0x6e   :  { %v1950_v44 = vor.u32 %v2583_v35, %v1949_v33  ;;  %v2351_v33 = vld [vmem:[#allocation5 + $0x48c] sm:$0xf0] }
  0x6f   :  { %1347 = vmatpush.bf16.msra.mxu0 %v1886_v39  ;;  %v2553_v39 = vld [vmem:[#allocation5 + $0x70] sm:$0xf0]  ;;  %v2249_v35 = vld [vmem:[#allocation5 + $0x3b0] sm:$0xf]  ;;  %v2354_v45 = vor.u32 %v2683_v30, %v2351_v33  ;;  %v2622_v33 = vld [vmem:[#allocation5 + $0x298] sm:$0xf0] }
  0x70   :  { %1373 = vmatpush.bf16.msra.mxu2 %v2078_v47  ;;  %v2580_v47 = vld [vmem:[#allocation5 + $0x148] sm:$0xf0]  ;;  %v2201_v30 = vld [vmem:[#allocation5 + $0x350] sm:$0xf] }
  0x71   :  { %1360 = vmatpush.bf16.msra.mxu1 %v1982_v48  ;;  %1385 = vmatpush.bf16.msra.mxu3 %v2186_v59  ;;  %v1830_v48 = vor.u32 %v2553_v39, %v1829_v38  ;;  %v1938_v56 = vor.u32 %v2580_v47, %v1937_v46  ;;  %v1925_v59 = vld [vmem:[#allocation5 + $0x128] sm:$0xf]  ;;  %v1902_v38 = vor.u32 %v2571_v25, %v1901_v24  ;;  %v2153_v39 = vld [vmem:[#allocation5 + $0x2f0] sm:$0xf]  ;;  %v2045_v46 = vld [vmem:[#allocation5 + $0x218] sm:$0xf] }
  0x72   :  { %v2607_v47 = vld [vmem:[#allocation5 + $0x220] sm:$0xf0]  ;;  %v2321_v24 = vld [vmem:[#allocation5 + $0x440] sm:$0xf]  ;;  %v2676_v25 = vld [vmem:[#allocation5 + $0x448] sm:$0xf0] }
  0x73   :  { %1348 = vmatpush.bf16.msra.mxu0 %v1874_v55  ;;  %v2665_v55 = vld [vmem:[#allocation5 + $0x3f4] sm:$0xf] }
  0x74   :  { %1374 = vmatpush.bf16.msra.mxu2 %v2066_v1  ;;  %v1805_v1 = vld [vmem:[#allocation5 + $0x38] sm:$0xf] }
  0x75   :  { %1361 = vmatpush.bf16.msra.mxu1 %v1970_v2  ;;  %1386 = vmatpush.bf16.msra.mxu3 %v2174_v12  ;;  %v2547_v2 = vld [vmem:[#allocation5 + $0x40] sm:$0xf0] }
  0x76   :  { %1349 = vmatmul.bf16.vlgmr.msra.gmra.mxu0 %v2924_v0  ;;  %v1806_v12 = vor.u32 %v2547_v2, %v1805_v1  ;;  %v2238_v1 = vor.u32 %v2655_v51, %v2237_v50  ;;  %v2297_v50 = vld [vmem:[#allocation5 + $0x410] sm:$0xf]  ;;  %v2670_v51 = vld [vmem:[#allocation5 + $0x418] sm:$0xf0] }
  0x77   :  { %1393 = vmatpush.bf16.msrb.mxu0 %v2342_v60  ;;  %1375 = vmatmul.bf16.vlgmr.msra.gmra.mxu2 %v2929_v10  ;;  %v2577_v60 = vld [vmem:[#allocation5 + $0x130] sm:$0xf0] }
  0x78   :  { %1419 = vmatpush.bf16.msrb.mxu2 %v1866_v5  ;;  %1362 = vmatmul.bf16.vlgmr.msra.gmra.mxu1 %v2920_v58  ;;  %v2282_v5 = vor.u32 %v2665_v55, %v2279_v57  ;;  %v1926_v7 = vor.u32 %v2577_v60, %v1925_v59  ;;  %v2046_v55 = vor.u32 %v2607_v47, %v2045_v46  ;;  %v1877_v57 = vld [vmem:[#allocation5 + $0xc8] sm:$0xf]  ;;  %v2565_v59 = vld [vmem:[#allocation5 + $0xd0] sm:$0xf0]  ;;  %v2604_v60 = vld [vmem:[#allocation5 + $0x208] sm:$0xf0] }
  0x79   :  { %1406 = vmatpush.bf16.msrb.mxu1 %v2438_v6  ;;  %1387 = vmatpush.bf16.msra.mxu3 %v2162_v27  ;;  %v2662_v6 = vld [vmem:[#allocation5 + $0x3dc] sm:$0xf]  ;;  %v1794_v27 = vor.u32 %v2544_v15, %v1793_v14  ;;  %v2679_v14 = vld [vmem:[#allocation5 + $0x460] sm:$0xf0]  ;;  %v1985_v47 = vld [vmem:[#allocation5 + $0x1a0] sm:$0xf] }
  0x7a   :  { %v2270_v18 = vor.u32 %v2662_v6, %v2267_v8  ;;  %v2129_v6 = vld [vmem:[#allocation5 + $0x2c0] sm:$0xf]  ;;  %v2619_v46 = vld [vmem:[#allocation5 + $0x280] sm:$0xf0] }
  0x7b   :  { %1394 = vmatpush.bf16.msrb.mxu0 %v2330_v13  ;;  %v2378_v13 = vor.u32 %v2689_v3, %v2375_v4  ;;  %v2225_v3 = vld [vmem:[#allocation5 + $0x380] sm:$0xf]  ;;  %v2652_v4 = vld [vmem:[#allocation5 + $0x388] sm:$0xf0] }
  0x7c   :  { %1420 = vmatpush.bf16.msrb.mxu2 %v1854_v20  ;;  %1388 = vmatmul.bf16.vlgmr.msra.gmra.mxu3 %v2932_v26  ;;  %v2255_v20 = vld [vmem:[#allocation5 + $0x3cc] sm:$0xf0]  ;;  %v2226_v15 = vor.u32 %v2652_v4, %v2225_v3  ;;  %v2667_v3 = vld [vmem:[#allocation5 + $0x400] sm:$0xf0] }
  0x7d   :  { %1407 = vmatpush.bf16.msrb.mxu1 %v2426_v21  ;;  %1432 = vmatpush.bf16.msrb.mxu3 %v1962_v31  ;;  %v1914_v21 = vor.u32 %v2574_v11, %v1913_v9  ;;  %v1781_v31 = vld [vmem:[#allocation5 + $0x8] sm:$0xf] }
  0x7e   :  { %v2021_v9 = vld [vmem:[#allocation5 + $0x1e8] sm:$0xf] }
  0x7f   :  { %1395 = vmatpush.bf16.msrb.mxu0 %v2318_v28  ;;  %v2366_v28 = vor.u32 %v2686_v16, %v2363_v17  ;;  %v2213_v17 = vld [vmem:[#allocation5 + $0x368] sm:$0xf] }
  0x80   :  { %1421 = vmatpush.bf16.msrb.mxu2 %v1842_v36  ;;  %v2658_v36 = vld [vmem:[#allocation5 + $0x3b8] sm:$0xf0] }
  0x81   :  { %1408 = vmatpush.bf16.msrb.mxu1 %v2414_v37  ;;  %1433 = vmatpush.bf16.msrb.mxu3 %v1950_v44  ;;  %v2258_v37 = vor.u32 %v2659_v19, %v2255_v20  ;;  %v1782_v44 = vor.u32 %v2541_v32, %v1781_v31  ;;  %v2117_v19 = vld [vmem:[#allocation5 + $0x2a8] sm:$0xf]  ;;  %v2625_v20 = vld [vmem:[#allocation5 + $0x2b0] sm:$0xf0]  ;;  %v2646_v31 = vld [vmem:[#allocation5 + $0x358] sm:$0xf0] }
  0x82   :  { %v2105_v32 = vld [vmem:[#allocation5 + $0x290] sm:$0xf] }
  0x83   :  { %1396 = vmatpush.bf16.msrb.mxu0 %v2306_v42  ;;  %v1889_v42 = vld [vmem:[#allocation5 + $0xe0] sm:$0xf] }
  0x84   :  { %1422 = vmatpush.bf16.msrb.mxu2 %v1830_v48  ;;  %v2250_v48 = vor.u32 %v2658_v36, %v2249_v35  ;;  %v1890_v52 = vor.u32 %v2568_v43, %v1889_v42  ;;  %v1997_v36 = vld [vmem:[#allocation5 + $0x1b8] sm:$0xf]  ;;  %v2106_v42 = vor.u32 %v2622_v33, %v2105_v32  ;;  %v2405_v32 = vld [vmem:[#allocation5 + $0x4e8] sm:$0xf]  ;;  %v2697_v33 = vld [vmem:[#allocation5 + $0x4f0] sm:$0xf0] }
  0x85   :  { %1409 = vmatpush.bf16.msrb.mxu1 %v2402_v49  ;;  %1434 = vmatpush.bf16.msrb.mxu3 %v1938_v56  ;;  %v2154_v49 = vor.u32 %v2634_v40, %v2153_v39  ;;  %v2033_v56 = vld [vmem:[#allocation5 + $0x200] sm:$0xf]  ;;  %v2309_v39 = vld [vmem:[#allocation5 + $0x428] sm:$0xf]  ;;  %v2673_v40 = vld [vmem:[#allocation5 + $0x430] sm:$0xf0] }
  0x86   :  { %v2034_v8 = vor.u32 %v2604_v60, %v2033_v56  ;;  %v2189_v43 = vld [vmem:[#allocation5 + $0x338] sm:$0xf]  ;;  %v2081_v56 = vld [vmem:[#allocation5 + $0x260] sm:$0xf]  ;;  %v1973_v60 = vld [vmem:[#allocation5 + $0x188] sm:$0xf] }
  0x87   :  { %1397 = vmatpush.bf16.msrb.mxu0 %v2294_v54  ;;  %v2631_v54 = vld [vmem:[#allocation5 + $0x2e0] sm:$0xf0] }
  0x88   :  { %1423 = vmatpush.bf16.msrb.mxu2 %v1818_v61  ;;  %v2345_v61 = vld [vmem:[#allocation5 + $0x470] sm:$0xf]  ;;  %v2142_v2 = vor.u32 %v2631_v54, %v2141_v53  ;;  %v2177_v54 = vld [vmem:[#allocation5 + $0x320] sm:$0xf] }
  0x89   :  { %1410 = vmatpush.bf16.msrb.mxu1 %v2390_v62  ;;  %1435 = vmatpush.bf16.msrb.mxu3 %v1926_v7  ;;  %v2682_v62 = vld [vmem:[#allocation5 + $0x478] sm:$0xf0]  ;;  %v2628_v7 = vld [vmem:[#allocation5 + $0x2c8] sm:$0xf0] }
  0x8a   :  { %v2346_v11 = vor.u32 %v2682_v62, %v2345_v61  ;;  %v2130_v16 = vor.u32 %v2628_v7, %v2129_v6  ;;  %v2589_v61 = vld [vmem:[#allocation5 + $0x190] sm:$0xf0]  ;;  %v2298_v62 = vor.u32 %v2670_v51, %v2297_v50  ;;  %v2165_v7 = vld [vmem:[#allocation5 + $0x308] sm:$0xf] }
  0x8b   :  { %1398 = vmatpush.bf16.msrb.mxu0 %v2282_v5  ;;  %v1878_v5 = vor.u32 %v2565_v59, %v1877_v57  ;;  %v2616_v57 = vld [vmem:[#allocation5 + $0x268] sm:$0xf0]  ;;  %v2685_v50 = vld [vmem:[#allocation5 + $0x490] sm:$0xf0] }
  0x8c   :  { %1424 = vmatpush.bf16.msrb.mxu2 %v1806_v12  ;;  %v2601_v12 = vld [vmem:[#allocation5 + $0x1f0] sm:$0xf0]  ;;  %v2082_v6 = vor.u32 %v2616_v57, %v2081_v56 }
  0x8d   :  { %1411 = vmatpush.bf16.msrb.mxu1 %v2378_v13  ;;  %1436 = vmatpush.bf16.msrb.mxu3 %v1914_v21  ;;  %v2333_v13 = vld [vmem:[#allocation5 + $0x458] sm:$0xf]  ;;  %v2009_v21 = vld [vmem:[#allocation5 + $0x1d0] sm:$0xf] }
  0x8e   :  { %v2334_v22 = vor.u32 %v2679_v14, %v2333_v13  ;;  %v2010_v35 = vor.u32 %v2598_v23, %v2009_v21  ;;  %v2261_v23 = vld [vmem:[#allocation5 + $0x3c8] sm:$0xf]  ;;  %v2721_v57 = vld [vmem:[#allocation8 + $0x70] sm:$0xff] }
  0x8f   :  { %1399 = vmatpush.bf16.msrb.mxu0 %v2270_v18  ;;  %v2649_v18 = vld [vmem:[#allocation5 + $0x370] sm:$0xf0] }
  0x90   :  { %1425 = vmatpush.bf16.msrb.mxu2 %v1794_v27  ;;  %v2214_v27 = vor.u32 %v2649_v18, %v2213_v17  ;;  %v2429_v18 = vld [vmem:[#allocation5 + $0x518] sm:$0xf] }
  0x91   :  { %1412 = vmatpush.bf16.msrb.mxu1 %v2366_v28  ;;  %1437 = vmatpush.bf16.msrb.mxu3 %v1902_v38  ;;  %v2118_v28 = vor.u32 %v2625_v20, %v2117_v19  ;;  %v2595_v38 = vld [vmem:[#allocation5 + $0x1c0] sm:$0xf0] }
  0x92   :  { %v2703_v19 = vld [vmem:[#allocation5 + $0x520] sm:$0xf0] }
  0x93   :  { %1400 = vmatpush.bf16.msrb.mxu0 %v2258_v37  ;;  %v2322_v37 = vor.u32 %v2676_v25, %v2321_v24  ;;  %v2661_v24 = vld [vmem:[#allocation5 + $0x3d0] sm:$0xf0]  ;;  %v2417_v25 = vld [vmem:[#allocation5 + $0x500] sm:$0xf] }
  0x94   :  { %1426 = vmatpush.bf16.msrb.mxu2 %v1782_v44  ;;  %v2643_v44 = vld [vmem:[#allocation5 + $0x340] sm:$0xf0] }
  0x95   :  { %1413 = vmatpush.bf16.msrb.mxu1 %v2354_v45  ;;  %1438 = vmatpush.bf16.msrb.mxu3 %v1890_v52  ;;  %v2093_v45 = vld [vmem:[#allocation5 + $0x278] sm:$0xf]  ;;  %v2190_v52 = vor.u32 %v2643_v44, %v2189_v43  ;;  %v2369_v44 = vld [vmem:[#allocation5 + $0x4a0] sm:$0xf] }
  0x96   :  { %1401 = vmatmul.bf16.vlgmr.msrb.gmra.mxu0 %v2936_v34  ;;  %v2094_v53 = vor.u32 %v2619_v46, %v2093_v45  ;;  %v2688_v45 = vld [vmem:[#allocation5 + $0x4a8] sm:$0xf0]  ;;  %v2954_v46 = vld [vmem:[#allocation7] sm:$0x7] }
  0x97   :  { %1445 = vmatpush.bf16.msra.mxu0 %v2058_v41  ;;  %1427 = vmatmul.bf16.vlgmr.msrb.gmra.mxu2 %v2922_v63  ;;  %v2022_v63 = vor.u32 %v2601_v12, %v2021_v9  ;;  %v2202_v41 = vor.u32 %v2646_v31, %v2201_v30  ;;  %v2069_v9 = vld [vmem:[#allocation5 + $0x248] sm:$0xf]  ;;  %v1974_v12 = vor.u32 %v2589_v61, %v1973_v60 }
  0x98   :  { %1471 = vmatpush.bf16.msra.mxu2 %v2250_v48  ;;  %1414 = vmatmul.bf16.vlgmr.msrb.gmra.mxu1 %v2934_v29  ;;  %v2310_v48 = vor.u32 %v2673_v40, %v2309_v39  ;;  %v2262_v30 = vor.u32 %v2661_v24, %v2261_v23  ;;  %v2691_v40 = vld [vmem:[#allocation5 + $0x4c0] sm:$0xf0]  ;;  %v311_v24 = vperm.slane %v2954_v46, 1 }
  0x99   :  { %1458 = vmatpush.bf16.msra.mxu1 %v2154_v49  ;;  %1439 = vmatpush.bf16.msrb.mxu3 %v1878_v5  ;;  %v2592_v49 = vld [vmem:[#allocation5 + $0x1a8] sm:$0xf0]  ;;  %v2706_v5 = vld [vmem:[#allocation5 + $0x538] sm:$0xf0]  ;;  %v2707_v61 = vld [vmem:[#allocation8] sm:$0xff] }
  0x9a   :  { %v1986_v59 = vor.u32 %v2592_v49, %v1985_v47  ;;  %v2709_v47 = vld [vmem:[#allocation8 + $0x10] sm:$0xff]  ;;  %v2357_v49 = vld [vmem:[#allocation5 + $0x488] sm:$0xf] }
  0x9b   :  { %1446 = vmatpush.bf16.msra.mxu0 %v2046_v55  ;;  %v2640_v55 = vld [vmem:[#allocation5 + $0x328] sm:$0xf0]  ;;  %v2715_v23 = vld [vmem:[#allocation8 + $0x40] sm:$0xff] }
  0x9c   :  { %1472 = vmatpush.bf16.msra.mxu2 %v2238_v1  ;;  %1440 = vmatmul.bf16.vlgmr.msrb.gmra.mxu3 %v2924_v0  ;;  %v1998_v0 = vor.u32 %v2595_v38, %v1997_v36  ;;  %v2441_v1 = vld [vmem:[#allocation5 + $0x530] sm:$0xf]  ;;  %v2178_v4 = vor.u32 %v2640_v55, %v2177_v54  ;;  %v2406_v36 = vor.u32 %v2697_v33, %v2405_v32  ;;  %v2694_v38 = vld [vmem:[#allocation5 + $0x4d8] sm:$0xf0] }
  0x9d   :  { %1459 = vmatpush.bf16.msra.mxu1 %v2142_v2  ;;  %1484 = vmatpush.bf16.msra.mxu3 %v2346_v11  ;;  %v2285_v2 = vld [vmem:[#allocation5 + $0x3f8] sm:$0xf]  ;;  %v2613_v11 = vld [vmem:[#allocation5 + $0x250] sm:$0xf0]  ;;  %v2442_v14 = vor.u32 %v2706_v5, %v2441_v1  ;;  %v2722_v54 = vld [vmem:[#allocation8 + $0x78] sm:$0xff]  ;;  %v2358_v55 = vor.u32 %v2685_v50, %v2357_v49 }
  0x9e   :  { %v2286_v13 = vor.u32 %v2667_v3, %v2285_v2  ;;  %v2070_v20 = vor.u32 %v2613_v11, %v2069_v9  ;;  %v2720_v5 = vld [vmem:[#allocation8 + $0x68] sm:$0xff] }
  0x9f   :  { %1447 = vmatpush.bf16.msra.mxu0 %v2034_v8  ;;  %v2637_v8 = vld [vmem:[#allocation5 + $0x310] sm:$0xf0] }
  0xa0   :  { %1473 = vmatpush.bf16.msra.mxu2 %v2226_v15  ;;  %v2273_v15 = vld [vmem:[#allocation5 + $0x3e0] sm:$0xf]  ;;  %v2166_v17 = vor.u32 %v2637_v8, %v2165_v7  ;;  %v2719_v8 = vld [vmem:[#allocation8 + $0x60] sm:$0xff] }
  0xa1   :  { %1460 = vmatpush.bf16.msra.mxu1 %v2130_v16  ;;  %1485 = vmatpush.bf16.msra.mxu3 %v2334_v22  ;;  %v2664_v16 = vld [vmem:[#allocation5 + $0x3e8] sm:$0xf0]  ;;  %v2430_v22 = vor.u32 %v2703_v19, %v2429_v18 }
  0xa2   :  { %v2274_v21 = vor.u32 %v2664_v16, %v2273_v15 }
  0xa3   :  { %1448 = vmatpush.bf16.msra.mxu0 %v2022_v63  ;;  %v2714_v63 = vld [vmem:[#allocation8 + $0x38] sm:$0xff] }
  0xa4   :  { %1474 = vmatpush.bf16.msra.mxu2 %v2214_v27  ;;  %v2700_v27 = vld [vmem:[#allocation5 + $0x508] sm:$0xf0] }
  0xa5   :  { %1461 = vmatpush.bf16.msra.mxu1 %v2118_v28  ;;  %1486 = vmatpush.bf16.msra.mxu3 %v2322_v37  ;;  %v2713_v28 = vld [vmem:[#allocation8 + $0x30] sm:$0xff]  ;;  %v2418_v31 = vor.u32 %v2700_v27, %v2417_v25  ;;  %v2393_v37 = vld [vmem:[#allocation5 + $0x4d0] sm:$0xf] }
  0xa6   :  { %v2394_v39 = vor.u32 %v2694_v38, %v2393_v37 }
  0xa7   :  { %1449 = vmatpush.bf16.msra.mxu0 %v2010_v35  ;;  %v2712_v35 = vld [vmem:[#allocation8 + $0x28] sm:$0xff] }
  0xa8   :  { %1475 = vmatpush.bf16.msra.mxu2 %v2202_v41 }
  0xa9   :  { %1462 = vmatpush.bf16.msra.mxu1 %v2106_v42  ;;  %1487 = vmatpush.bf16.msra.mxu3 %v2310_v48  ;;  %v310_v48 = vperm.slane %v2954_v46, 0 }
  0xab   :  { %1450 = vmatpush.bf16.msra.mxu0 %v1998_v0 }
  0xac   :  { %1476 = vmatpush.bf16.msra.mxu2 %v2190_v52 }
  0xad   :  { %1463 = vmatpush.bf16.msra.mxu1 %v2094_v53  ;;  %1488 = vmatpush.bf16.msra.mxu3 %v2298_v62  ;;  %v2708_v53 = vld [vmem:[#allocation8 + $0x8] sm:$0xff] }
  0xaf   :  { %1451 = vmatpush.bf16.msra.mxu0 %v1986_v59 }
  0xb0   :  { %1477 = vmatpush.bf16.msra.mxu2 %v2178_v4 }
  0xb1   :  { %1464 = vmatpush.bf16.msra.mxu1 %v2082_v6  ;;  %1489 = vmatpush.bf16.msra.mxu3 %v2286_v13 }
  0xb3   :  { %1452 = vmatpush.bf16.msra.mxu0 %v1974_v12  ;;  %v1246_v42 = vpop.f32.mrf.mxu0  ;;  %v2718_v12 = vld [vmem:[#allocation8 + $0x58] sm:$0xff] }
  0xb4   :  { %1478 = vmatpush.bf16.msra.mxu2 %v2166_v17  ;;  %v1247_v59 = vadd.f32 %v1246_v42, %v310_v48  ;;  %v2726_v48 = vld [vmem:[#allocation8 + $0x98] sm:$0xff] }
  0xb5   :  { %1465 = vmatpush.bf16.msra.mxu1 %v2070_v20  ;;  %1490 = vmatpush.bf16.msra.mxu3 %v2274_v21  ;;  %v1259_v41 = vpop.f32.mrf.mxu1 }
  0xb6   :  { %1453 = vmatmul.bf16.vlgmr.msra.gmra.mxu0 %v2920_v58  ;;  %v2711_v58 = vld [vmem:[#allocation8 + $0x20] sm:$0xff]  ;;  %v1260_v62 = vadd.f32 %v1259_v41, %v1247_v59 }
  0xb7   :  { %1497 = vmatpush.bf16.msrb.mxu0 %v2442_v14  ;;  %1479 = vmatmul.bf16.vlgmr.msra.gmra.mxu2 %v2932_v26  ;;  %v2381_v26 = vld [vmem:[#allocation5 + $0x4b8] sm:$0xf] }
  0xb8   :  { %1466 = vmatmul.bf16.vlgmr.msra.gmra.mxu1 %v2929_v10  ;;  %v2710_v10 = vld [vmem:[#allocation8 + $0x18] sm:$0xff]  ;;  %v2382_v43 = vor.u32 %v2691_v40, %v2381_v26  ;;  %1725 = vmatpush.bf16.msrb.mxu2 %v2722_v54  ;;  %v2729_v26 = vld [vmem:[#allocation8 + $0xb0] sm:$0xff] }
  0xb9   :  { %1712 = vmatpush.bf16.msrb.mxu1 %v2714_v63  ;;  %1491 = vmatpush.bf16.msra.mxu3 %v2262_v30  ;;  %v2716_v63 = vld [vmem:[#allocation8 + $0x48] sm:$0xff] }
  0xba   :  { %v1272_v0 = vpop.f32.mrf.mxu2 }
  0xbb   :  { %1498 = vmatpush.bf16.msrb.mxu0 %v2430_v22  ;;  %v1248_v52 = vpop.f32.mrf.mxu0  ;;  %v1273_v2 = vadd.f32 %v1272_v0, %v1260_v62 }
  0xbc   :  { %1492 = vmatmul.bf16.vlgmr.msra.gmra.mxu3 %v2936_v34  ;;  %v2370_v34 = vor.u32 %v2688_v45, %v2369_v44  ;;  %1726 = vmatpush.bf16.msrb.mxu2 %v2721_v57  ;;  %v312_v57 = vperm.slane %v2954_v46, 2 }
  0xbd   :  { %1713 = vmatpush.bf16.msrb.mxu1 %v2713_v28  ;;  %v1261_v51 = vpop.f32.mrf.mxu1 }
  0xbe   :  { %v2725_v51 = vld [vmem:[#allocation8 + $0x90] sm:$0xff] }
  0xbf   :  { %1499 = vmatpush.bf16.msrb.mxu0 %v2418_v31  ;;  %v1285_v56 = vpop.f32.mrf.mxu3 }
  0xc0   :  { %v1286_v3 = vadd.f32 %v1285_v56, %v1273_v2  ;;  %1727 = vmatpush.bf16.msrb.mxu2 %v2720_v5 }
  0xc1   :  { %1714 = vmatpush.bf16.msrb.mxu1 %v2712_v35 }
  0xc2   :  { %v1274_v60 = vpop.f32.mrf.mxu2 }
  0xc3   :  { %1500 = vmatpush.bf16.msrb.mxu0 %v2406_v36 }
  0xc4   :  { %1728 = vmatpush.bf16.msrb.mxu2 %v2719_v8 }
  0xc5   :  { %1715 = vmatpush.bf16.msrb.mxu1 %v2711_v58  ;;  %v2730_v58 = vld [vmem:[#allocation8 + $0xb8] sm:$0xff] }
  0xc6   :  { %1738 = vmatpush.bf16.msrb.mxu3 %v2730_v58 }
  0xc7   :  { %1501 = vmatpush.bf16.msrb.mxu0 %v2394_v39  ;;  %v1287_v1 = vpop.f32.mrf.mxu3 }
  0xc8   :  { %1729 = vmatpush.bf16.msrb.mxu2 %v2718_v12 }
  0xc9   :  { %1716 = vmatpush.bf16.msrb.mxu1 %v2710_v10 }
  0xca   :  { %1739 = vmatpush.bf16.msrb.mxu3 %v2729_v26 }
  0xcb   :  { %1502 = vmatpush.bf16.msrb.mxu0 %v2382_v43  ;;  %v2728_v43 = vld [vmem:[#allocation8 + $0xa8] sm:$0xff] }
  0xcd   :  { %1717 = vmatpush.bf16.msrb.mxu1 %v2709_v47  ;;  %v2727_v47 = vld [vmem:[#allocation8 + $0xa0] sm:$0xff] }
  0xce   :  { %1740 = vmatpush.bf16.msrb.mxu3 %v2728_v43 }
  0xcf   :  { %1503 = vmatpush.bf16.msrb.mxu0 %v2370_v34 }
  0xd1   :  { %1718 = vmatpush.bf16.msrb.mxu1 %v2708_v53  ;;  %v2724_v53 = vld [vmem:[#allocation8 + $0x88] sm:$0xff] }
  0xd2   :  { %1741 = vmatpush.bf16.msrb.mxu3 %v2727_v47 }
  0xd3   :  { %1504 = vmatpush.bf16.msrb.mxu0 %v2358_v55  ;;  %v1298_v4 = vpop.f32.mrf.mxu0  ;;  %v2723_v55 = vld [vmem:[#allocation8 + $0x80] sm:$0xff] }
  0xd4   :  { %v1299_v6 = vadd.f32 %v1298_v4, %v1286_v3 }
  0xd5   :  { %1719 = vmatpush.bf16.msrb.mxu1 %v2707_v61  ;;  %v1311_v7 = vpop.f32.mrf.mxu1 }
  0xd6   :  { %1505 = vmatmul.bf16.vlgmr.msrb.gmra.mxu0 %v2934_v29  ;;  %v1312_v9 = vadd.f32 %v1311_v7, %v1299_v6  ;;  %v2717_v29 = vld [vmem:[#allocation8 + $0x50] sm:$0xff]  ;;  %1742 = vmatpush.bf16.msrb.mxu3 %v2726_v48 }
  0xd7   :  { %1730 = vmatpush.bf16.msrb.mxu2 %v2717_v29  ;;  %v2740_v29 = vld [vmem:[%s2970_s4] ss:$0 sm:$0xff] }
  0xda   :  { %v1324_v11 = vpop.f32.mrf.mxu2  ;;  %1743 = vmatpush.bf16.msrb.mxu3 %v2725_v51 }
  0xdb   :  { %v1325_v13 = vadd.f32 %v1324_v11, %v1312_v9  ;;  %v1300_v14 = vpop.f32.mrf.mxu0  ;;  %1731 = vmatpush.bf16.msrb.mxu2 %v2716_v63 }
  0xdd   :  { %v1510_v15 = vmax.f32 %v1325_v13, 0.0  ;;  %v1313_v16 = vpop.f32.mrf.mxu1 }
  0xde   :  { %1744 = vmatpush.bf16.msrb.mxu3 %v2724_v53 }
  0xdf   :  { %v1513_v17 = vpack.c.bf16 %v1510_v15, %v1510_v15  ;;  %v1337_v18 = vpop.f32.mrf.mxu3  ;;  %1732 = vmatpush.bf16.msrb.mxu2 %v2715_v23 }
  0xe0   :  { %v1338_v28 = vadd.f32 %v1337_v18, %v311_v24 }
  0xe1   :  { %1720 = vmatmul.bf16.vlgmr.msrb.gmra.mxu1 %v1513_v17 }
  0xe2   :  { %v1326_v19 = vpop.f32.mrf.mxu2  ;;  %1745 = vmatpush.bf16.msrb.mxu3 %v2723_v55 }
  0xe7   :  { %v1339_v20 = vpop.f32.mrf.mxu3 }
  0xf3   :  { %v1350_v21 = vpop.f32.mrf.mxu0 }
  0xf4   :  { %v1351_v31 = vadd.f32 %v1350_v21, %v1338_v28 }
  0xf5   :  { %v1363_v22 = vpop.f32.mrf.mxu1 }
  0xf6   :  { %v1364_v35 = vadd.f32 %v1363_v22, %v1351_v31 }
  0xfa   :  { %v1376_v25 = vpop.f32.mrf.mxu2 }
  0xfb   :  { %v1352_v27 = vpop.f32.mrf.mxu0  ;;  %v1377_v36 = vadd.f32 %v1376_v25, %v1364_v35 }
  0xfd   :  { %v1365_v30 = vpop.f32.mrf.mxu1 }
  0xff   :  { %v1389_v32 = vpop.f32.mrf.mxu3 }
 0x100   :  { %v1390_v38 = vadd.f32 %v1389_v32, %v1377_v36 }
 0x102   :  { %v1378_v33 = vpop.f32.mrf.mxu2 }
 0x107   :  { %v1391_v37 = vpop.f32.mrf.mxu3 }
 0x113   :  { %v1402_v39 = vpop.f32.mrf.mxu0 }
 0x114   :  { %v1403_v40 = vadd.f32 %v1402_v39, %v1390_v38 }
 0x115   :  { %v1415_v41 = vpop.f32.mrf.mxu1 }
 0x116   :  { %v1416_v42 = vadd.f32 %v1415_v41, %v1403_v40 }
 0x118   :  { %v1511_v10 = vmax.f32 %v1416_v42, 0.0 }
 0x11a   :  { %v1514_v44 = vpack.c.bf16 %v1511_v10, %v1511_v10  ;;  %v1428_v45 = vpop.f32.mrf.mxu2 }
 0x11b   :  { %v1404_v0 = vpop.f32.mrf.mxu0  ;;  %v1429_v60 = vadd.f32 %v1428_v45, %v312_v57 }
 0x11c   :  { %1733 = vmatmul.bf16.vlgmr.msrb.gmra.mxu2 %v1514_v44 }
 0x11d   :  { %v1417_v34 = vpop.f32.mrf.mxu1 }
 0x11f   :  { %v1441_v49 = vpop.f32.mrf.mxu3 }
 0x120   :  { %v1442_v1 = vadd.f32 %v1441_v49, %v1429_v60 }
 0x122   :  { %v1430_v50 = vpop.f32.mrf.mxu2 }
 0x127   :  { %v1443_v52 = vpop.f32.mrf.mxu3 }
 0x133   :  { %v1454_v54 = vpop.f32.mrf.mxu0 }
 0x134   :  { %v1455_v4 = vadd.f32 %v1454_v54, %v1442_v1 }
 0x135   :  { %v1467_v56 = vpop.f32.mrf.mxu1 }
 0x136   :  { %v1468_v5 = vadd.f32 %v1467_v56, %v1455_v4 }
 0x13a   :  { %v1480_v59 = vpop.f32.mrf.mxu2 }
 0x13b   :  { %v1456_v61 = vpop.f32.mrf.mxu0  ;;  %v1481_v7 = vadd.f32 %v1480_v59, %v1468_v5 }
 0x13d   :  { %v1469_v62 = vpop.f32.mrf.mxu1 }
 0x13f   :  { %v1493_v2 = vpop.f32.mrf.mxu3 }
 0x140   :  { %v1494_v8 = vadd.f32 %v1493_v2, %v1481_v7 }
 0x142   :  { %v1482_v3 = vpop.f32.mrf.mxu2 }
 0x147   :  { %v1495_v6 = vpop.f32.mrf.mxu3 }
 0x153   :  { %v1506_v9 = vpop.f32.mrf.mxu0 }
 0x154   :  { %v1507_v11 = vadd.f32 %v1506_v9, %v1494_v8 }
 0x156   :  { %v1512_v12 = vmax.f32 %v1507_v11, 0.0 }
 0x158   :  { %v1515_v13 = vpack.c.bf16 %v1512_v12, %v1512_v12 }
 0x15a   :  { %1746 = vmatmul.bf16.vlgmr.msrb.gmra.mxu3 %v1515_v13 }
 0x15b   :  { %v1508_v14 = vpop.f32.mrf.mxu0 }
 0x15e   :  { %v1721_v15 = vpop.f32.mrf.mxu1 }
 0x15f   :  { %v1722_v18 = vadd.f32 %v2740_v29, %v1721_v15 }
 0x166   :  { %v1723_v46 = vpop.f32.mrf.mxu1 }
 0x19f   :  { %v1734_v16 = vpop.f32.mrf.mxu2 }
 0x1a0   :  { %v1735_v19 = vadd.f32 %v1734_v16, %v1722_v18 }
 0x1a7   :  { %v1736_v17 = vpop.f32.mrf.mxu2 }
 0x1dd   :  { %v1747_v20 = vpop.f32.mrf.mxu3 }
 0x1de   :  { %v1748_v63 = vadd.f32 %v1747_v20, %v1735_v19 }
 0x1e0   :  { %1751 = vst [vmem:[#allocation10] sm:$0xff] %v1748_v63 }
 0x1e1   :  { %1762 = dma.vmem_to_hbm [thread:$0]  %s1758_s16, 128, %s1760_s19, [#allocation4]  }
 0x1e5   :  { %v1749_v21 = vpop.f32.mrf.mxu3 }
 0x1e6   :  { %2867 = dma.done.wait [#allocation4], 128  }
 0x1e7   :  { %2868 = vsyncadd [#allocation4], 4294967168 }
 0x1e8   :  { %1767 = vsyncpa [#allocation3], 1 }
 0x1e9   :  { %1768 = vsyncpa [#allocation6], 1 }
 0x1ea   :  { %1769 = vsyncpa [#allocation9], 1 }
 0x1eb   :  { %1770 = vsyncpa [#allocation4], 1 }

</bundles_post_ra>
